<compile_context>
chip_gen: v5e
topology: v5e:2x2
jax: 0.10.0
libtpu: 0.0.40
codegen_flags: <defaults>
</compile_context>

<pallas_src>
import functools
import math

import jax
import jax.numpy as jnp
from jax.experimental import pallas as pl
from jax.experimental.pallas import tpu as pltpu

_LANES = 128


def _linear_clamp_kernel(x_ref, w_ref, o_ref, *, min_value, max_value):
    # x_ref: VMEM (tr, 3*128)  natural-layout tile (interleaved pixel/channel)
    # w_ref: VMEM (3*128, 128) constant weight-embedding matrix (VMEM-resident)
    # o_ref: VMEM (tr, 128)    lane-dense output tile
    y = jnp.dot(
        x_ref[...],
        w_ref[...],
        precision=jax.lax.Precision.HIGHEST,  # keep full f32 accuracy on MXU
        preferred_element_type=jnp.float32,
    )
    y = jnp.maximum(y, jnp.float32(min_value))  # clamp_min
    y = jnp.minimum(y, jnp.float32(max_value))  # clamp_max
    o_ref[...] = y.astype(o_ref.dtype)


def linear_clamp(x, weight, min_value=0.0, max_value=6.0, block_rows=1024):
    """x: (..., C) float32 (C = in_features), weight: (1, C) torch Linear layout."""
    in_features = weight.shape[-1]  # 3
    lead_shape = x.shape[:-1]
    n = math.prod(lead_shape)
    if n == 0:  # degenerate zero-sized input
        return jnp.zeros((*lead_shape, 1), dtype=x.dtype)

    group = in_features * _LANES  # 384: one 128-output group, channel-interleaved
    rows = pl.cdiv(n, _LANES)

    # Row tiling: multiple of 8 (sublane constraint).  When the whole problem
    # would fit in a single block, split it so the grid has >= 2 steps and the
    # "parallel" axis can be sharded across both TensorCores on v7x.
    if rows <= 8:
        tr = rows
    else:
        half = ((pl.cdiv(rows, 2) + 7) // 8) * 8
        tr = min(block_rows, half)
        tr = max(8, (tr // 8) * 8)
    grid = (pl.cdiv(rows, tr),)

    # Zero-copy natural-layout view (rows, 384).  Only a tiny contiguous tail
    # pad when n is not a multiple of 128; no transpose, no extra HBM pass.
    x_flat = x.reshape(-1)
    total = rows * group
    if total != n * in_features:
        x_flat = jnp.pad(x_flat, (0, total - n * in_features))
    x_blocked = x_flat.reshape(rows, group)

    # Constant (384, 128) weight-embedding matrix: W[3k+c, k] = w[c].
    w_vec = weight.reshape(in_features).astype(jnp.float32)
    j = jax.lax.broadcasted_iota(jnp.int32, (group, _LANES), 0)  # 3k + c
    k = jax.lax.broadcasted_iota(jnp.int32, (group, _LANES), 1)  # output lane
    w_mat = jnp.where(j // in_features == k, w_vec[j % in_features],
                      jnp.float32(0.0))

    kernel = functools.partial(
        _linear_clamp_kernel, min_value=min_value, max_value=max_value
    )

    # Right-size the VMEM request (double-buffered in/out tiles + weights +
    # slack), instead of asking for all of physical VMEM (v7x has only 64 MiB).
    in_tile_bytes = tr * group * 4
    out_tile_bytes = tr * _LANES * 4
    w_bytes = group * _LANES * 4
    vmem_limit = min(
        32 * 1024 * 1024,
        max(16 * 1024 * 1024,
            2 * (in_tile_bytes + out_tile_bytes) + 2 * w_bytes + 2 * 1024 * 1024),
    )

    cost = pl.CostEstimate(
        flops=2 * rows * group * _LANES + 2 * rows * _LANES,
        transcendentals=0,
        bytes_accessed=rows * (group + _LANES) * 4 + w_bytes,  # 16 B / output elem
    )

    out = pl.pallas_call(
        kernel,
        out_shape=jax.ShapeDtypeStruct((rows, _LANES), x.dtype),
        grid=grid,
        in_specs=[
            pl.BlockSpec((tr, group), lambda i: (i, 0)),
            pl.BlockSpec((group, _LANES), lambda i: (0, 0)),  # resident weights
        ],
        out_specs=pl.BlockSpec((tr, _LANES), lambda i: (i, 0)),
        compiler_params=pltpu.CompilerParams(
            dimension_semantics=("parallel",),  # megacore sharding on v7x
            vmem_limit_bytes=vmem_limit,
        ),
        cost_estimate=cost,
    )(x_blocked, w_mat)

    out_flat = out.reshape(rows * _LANES)[:n]
    return out_flat.reshape(*lead_shape, 1)


if __name__ == "__main__":
    key = jax.random.PRNGKey(0)
    kx, kw = jax.random.split(key)

    # Channels-last layout of the spec's (1, 3, 64, 64): Linear acts on the
    # last dim (= in_features = 3).
    B, H, W, C = 1, 64, 64, 3
    x = jax.random.normal(kx, (B, H, W, C), dtype=jnp.float32)

    # Deterministic Linear(3, 1, bias=False) weight, torch layout (out, in).
    bound = 1.0 / math.sqrt(C)
    weight = jax.random.uniform(
        kw, (1, C), dtype=jnp.float32, minval=-bound, maxval=bound
    )

    fn = jax.jit(functools.partial(linear_clamp, min_value=0.0, max_value=6.0))
    out = jax.block_until_ready(fn(x, weight))

    # Reference check (pure VPU math, no matmul-precision ambiguity).
    ref = jnp.clip(
        jnp.sum(x * weight.reshape(-1), axis=-1, keepdims=True), 0.0, 6.0
    )
    assert out.shape == (B, H, W, 1)
    assert jnp.allclose(out, ref, atol=1e-5, rtol=1e-5)

    print("KERNEL_OK")
</pallas_src>

<mosaic_0001>
module attributes {stable_mosaic.version = 11 : i64} {
  func.func @_linear_clamp_kernel(%arg0: i32, %arg1: memref<16x384xf32, #tpu.memory_space<vmem>>, %arg2: memref<384x128xf32, #tpu.memory_space<vmem>>, %arg3: memref<16x128xf32, #tpu.memory_space<vmem>>) attributes {dimension_semantics = [#tpu.dimension_semantics<parallel>], iteration_bounds = array<i64: 2>, scalar_prefetch = 0 : i64, scratch_operands = 0 : i64, tpu.core_type = #tpu.core_type<tc>, window_params = [{transform_indices = @transform_0, window_bounds = array<i64: 16, 384>}, {pipeline_mode = #tpu.pipeline_mode<synchronous>, transform_indices = @transform_1, window_bounds = array<i64: 384, 128>}, {transform_indices = @transform_2, window_bounds = array<i64: 16, 128>}]} {
    %c0 = arith.constant 0 : index
    %c0_0 = arith.constant 0 : index
    %0 = vector.load %arg1[%c0, %c0_0] : memref<16x384xf32, #tpu.memory_space<vmem>>, vector<16x384xf32>
    %c0_1 = arith.constant 0 : index
    %c0_2 = arith.constant 0 : index
    %1 = vector.load %arg2[%c0_1, %c0_2] : memref<384x128xf32, #tpu.memory_space<vmem>>, vector<384x128xf32>
    %cst = arith.constant dense<0.000000e+00> : vector<16x128xf32>
    %2 = tpu.matmul %0, %1, %cst {dimension_numbers = #tpu.dot_dimension_numbers<[1], [0], [0], [1], [0, 0, 1, 1], [], []>, precision = #tpu.contract_precision<fp32>} : vector<16x384xf32>, vector<384x128xf32>, vector<16x128xf32> -> vector<16x128xf32>
    %cst_3 = arith.constant 0.000000e+00 : f32
    %3 = vector.broadcast %cst_3 : f32 to vector<16x128xf32>
    %4 = arith.maximumf %2, %3 : vector<16x128xf32>
    %cst_4 = arith.constant 6.000000e+00 : f32
    %5 = vector.broadcast %cst_4 : f32 to vector<16x128xf32>
    %6 = arith.minimumf %4, %5 : vector<16x128xf32>
    %c0_5 = arith.constant 0 : index
    %c0_6 = arith.constant 0 : index
    %7 = vector.load %arg3[%c0_5, %c0_6] : memref<16x128xf32, #tpu.memory_space<vmem>>, vector<16x128xf32>
    tpu.vector_store %arg3[%c0_5, %c0_6], %6 {strides = array<i32>} : memref<16x128xf32, #tpu.memory_space<vmem>>, vector<16x128xf32>,
    return
  }
  func.func @transform_0(%arg0: i32) -> (i32, i32) {
    %c0_i32 = arith.constant 0 : i32
    %c0_i32_0 = arith.constant 0 : i32
    return %arg0, %c0_i32 : i32, i32
  }
  func.func @transform_1(%arg0: i32) -> (i32, i32) {
    %c0_i32 = arith.constant 0 : i32
    %c0_i32_0 = arith.constant 0 : i32
    %c0_i32_1 = arith.constant 0 : i32
    return %c0_i32, %c0_i32_0 : i32, i32
  }
  func.func @transform_2(%arg0: i32) -> (i32, i32) {
    %c0_i32 = arith.constant 0 : i32
    %c0_i32_0 = arith.constant 0 : i32
    return %arg0, %c0_i32 : i32, i32
  }
}

</mosaic_0001>

<bundles_post_ra>
// kernel: linear_clamp.1
= control target key start
LH: loop header
LB: loop body
LE: loop exit
PB: predicated region body
PF: predicated region fallthrough
CT: control target
= control target key end

     0   :  { %s1457_s9 = smov 0   ;;  %s2374_s0 = inlined_call_operand.vmem [shape: f32[32,384], index: 0, kind: input, shape index: {}]   ;;  %s2375_s1 = inlined_call_operand.vmem [shape: f32[384,128], index: 1, kind: input, shape index: {}]   ;;  %s2376_s2 = inlined_call_operand.vmem [shape: f32[32,128], index: 2, kind: output, shape index: {}]  }
   0x1 LB: > { %s1382_s10 = sadd.s32 4294967295, %s1440_s9   ;;  %p1386_p0 = scmp.ge.s32.totalorder %s1440_s9, 1  ;;  %s1440_s9 = sphi %s1457_s9, %s12_s9  }
   0x2   : > { %p114_p1 = scmp.lt.s32.totalorder %s1440_s9, 3 }
   0x4   : > { %p115_p2 = pnand %p1386_p0, %p114_p1 }
   0x6   : > { %118 = sbr.rel (%p115_p2) target bundleno = 332 (0x14c), region = 28 }
   0xb   : > { %v171_v0 = vld [vmem:[%s2375_s1 + $0x78] sm:$0xff]  ;;  %v170_v1 = vld [vmem:[%s2375_s1 + $0x70] sm:$0xff]  ;;  %v169_v2 = vld [vmem:[%s2375_s1 + $0x68] sm:$0xff]  ;;  %s1671_s23 = sshll.u32 %s1382_s10, 1 }
   0xc   : > { %v1474_v3 = vand.u32 4294901760, %v171_v0  ;;  %v1476_v4 = vand.u32 4294901760, %v170_v1  ;;  %v1478_v5 = vand.u32 4294901760, %v169_v2  ;;  %v168_v6 = vld [vmem:[%s2375_s1 + $0x60] sm:$0xff]  ;;  %v167_v7 = vld [vmem:[%s2375_s1 + $0x58] sm:$0xff]  ;;  %v166_v8 = vld [vmem:[%s2375_s1 + $0x50] sm:$0xff] }
   0xd   : > { %v1489_v9 = vand.u32 4294901760, %v168_v6  ;;  %v1491_v10 = vand.u32 4294901760, %v167_v7  ;;  %v1493_v11 = vand.u32 4294901760, %v166_v8  ;;  %v165_v12 = vld [vmem:[%s2375_s1 + $0x48] sm:$0xff]  ;;  %v164_v13 = vld [vmem:[%s2375_s1 + $0x40] sm:$0xff]  ;;  %v163_v18 = vld [vmem:[%s2375_s1 + $0x38] sm:$0xff] }
   0xe   : > { %205 = vmatpush.msra.mxu0 %v1474_v3  ;;  %v1503_v14 = vsub.f32 %v171_v0, %v1474_v3  ;;  %v1506_v15 = vsub.f32 %v170_v1, %v1476_v4  ;;  %418 = vmatpush.msra.mxu3 %v1474_v3  ;;  %v1510_v16 = vsub.f32 %v169_v2, %v1478_v5  ;;  %v1512_v17 = vand.u32 4294901760, %v165_v12  ;;  %v162_v29 = vld [vmem:[%s2375_s1 + $0x30] sm:$0xff]  ;;  %v161_v36 = vld [vmem:[%s2375_s1 + $0x28] sm:$0xff]  ;;  %v160_v42 = vld [vmem:[%s2375_s1 + $0x20] sm:$0xff]  ;;  %p138_p3 = scmp.lt.s32.totalorder %s1671_s23, 3 }
   0xf   : > { %v1518_v19 = vsub.f32 %v168_v6, %v1489_v9  ;;  %v1521_v20 = vsub.f32 %v167_v7, %v1491_v10  ;;  %v1524_v21 = vsub.f32 %v166_v8, %v1493_v11  ;;  %v1526_v22 = vand.u32 4294901760, %v164_v13  ;;  %v159_v48 = vld [vmem:[%s2375_s1 + $0x18] sm:$0xff]  ;;  %v158_v54 = vld [vmem:[%s2375_s1 + $0x10] sm:$0xff]  ;;  %v157_v61 = vld [vmem:[%s2375_s1 + $0x8] sm:$0xff] }
  0x10   : > { %207 = vmatpush.msra.mxu0 %v1476_v4  ;;  %360 = vmatpush.msra.mxu2 %v1503_v14  ;;  %v255_v23 = vand.u32 4294901760, %v1503_v14  ;;  %v261_v24 = vand.u32 4294901760, %v1506_v15  ;;  %v2390_v25 = vand.u32 4294901760, %v1510_v16  ;;  %v1536_v27 = vsub.f32 %v165_v12, %v1512_v17  ;;  %v187_v59 = vld [vmem:[%s2375_s1 + $0xf8] sm:$0xff]  ;;  %v156_v2 = vld [vmem:[%s2375_s1] sm:$0xff]  ;;  %v186_v6 = vld [vmem:[%s2375_s1 + $0xf0] sm:$0xff] }
  0x11   : > { %420 = vmatpush.msra.mxu3 %v1476_v4  ;;  %v2389_v26 = vand.u32 4294901760, %v1518_v19  ;;  %v1538_v28 = vand.u32 4294901760, %v163_v18  ;;  %v2386_v33 = vand.u32 4294901760, %v1521_v20  ;;  %v1557_v34 = vsub.f32 %v164_v13, %v1526_v22  ;;  %s2432_s23 = smov (!%p138_p3, %s1671_s23), 3 }
  0x12   : > { %209 = vmatpush.msra.mxu0 %v1478_v5  ;;  %363 = vmatpush.msra.mxu2 %v1506_v15  ;;  %v256_v30 = vsub.f32 %v1503_v14, %v255_v23  ;;  %v262_v31 = vsub.f32 %v1506_v15, %v261_v24  ;;  %v268_v32 = vsub.f32 %v1510_v16, %v2390_v25  ;;  %v2385_v35 = vand.u32 4294901760, %v1524_v21  ;;  %s1425_s7 = smul.u32 24, %s2432_s23 }
  0x13   : > { %422 = vmatpush.msra.mxu3 %v1478_v5  ;;  %v274_v39 = vsub.f32 %v1518_v19, %v2389_v26  ;;  %v1568_v40 = vand.u32 4294901760, %v162_v29  ;;  %v2383_v41 = vand.u32 4294901760, %v1536_v27  ;;  %v280_v44 = vsub.f32 %v1521_v20, %v2386_v33 }
  0x14   : > { %211 = vmatpush.msra.mxu0 %v1489_v9  ;;  %366 = vmatpush.msra.mxu2 %v1510_v16  ;;  %v257_v37 = vand.u32 4294901760, %v256_v30  ;;  %v263_v38 = vand.u32 4294901760, %v262_v31  ;;  %v269_v43 = vand.u32 4294901760, %v268_v32  ;;  %v1580_v45 = vsub.f32 %v163_v18, %v1538_v28  ;;  %v185_v30 = vld [vmem:[%s2375_s1 + $0xe8] sm:$0xff]  ;;  %s1809_s16 = scalar_lea.vmem %s2374_s0, %s1425_s7 }
  0x15   : > { %424 = vmatpush.msra.mxu3 %v1489_v9  ;;  %v1582_v46 = vand.u32 4294901760, %v161_v36  ;;  %v286_v47 = vsub.f32 %v1524_v21, %v2385_v35  ;;  %v275_v49 = vand.u32 4294901760, %v274_v39  ;;  %v1594_v50 = vsub.f32 %v162_v29, %v1568_v40 }
  0x16   : > { %213 = vmatpush.msra.mxu0 %v1491_v10  ;;  %258 = vmatpush.msra.mxu1 %v257_v37  ;;  %v1596_v51 = vand.u32 4294901760, %v160_v42  ;;  %v2382_v52 = vand.u32 4294901760, %v1557_v34  ;;  %v292_v53 = vsub.f32 %v1536_v27, %v2383_v41  ;;  %v281_v55 = vand.u32 4294901760, %v280_v44  ;;  %v184_v44 = vld [vmem:[%s2375_s1 + $0xe0] sm:$0xff] }
  0x17   : > { %369 = vmatpush.msra.mxu2 %v1518_v19  ;;  %426 = vmatpush.msra.mxu3 %v1491_v10  ;;  %v1609_v56 = vsub.f32 %v161_v36, %v1582_v46  ;;  %v1611_v57 = vand.u32 4294901760, %v159_v48  ;;  %v2381_v58 = vand.u32 4294901760, %v1580_v45  ;;  %v287_v60 = vand.u32 4294901760, %v286_v47 }
  0x18   : > { %215 = vmatpush.msra.mxu0 %v1493_v11  ;;  %264 = vmatpush.msra.mxu1 %v263_v38  ;;  %v298_v62 = vsub.f32 %v1557_v34, %v2382_v52  ;;  %v1627_v63 = vsub.f32 %v160_v42, %v1596_v51  ;;  %v1629_v0 = vand.u32 4294901760, %v158_v54  ;;  %v2379_v1 = vand.u32 4294901760, %v1594_v50 }
  0x19   : > { %372 = vmatpush.msra.mxu2 %v1521_v20  ;;  %428 = vmatpush.msra.mxu3 %v1493_v11  ;;  %v293_v7 = vand.u32 4294901760, %v292_v53  ;;  %v1640_v8 = vand.u32 4294901760, %v187_v59  ;;  %v304_v12 = vsub.f32 %v1580_v45, %v2381_v58  ;;  %v1647_v13 = vsub.f32 %v159_v48, %v1611_v57 }
  0x1a   : > { %217 = vmatpush.msra.mxu0 %v1512_v17  ;;  %270 = vmatpush.msra.mxu1 %v269_v43  ;;  %v1649_v18 = vand.u32 4294901760, %v157_v61  ;;  %v2378_v29 = vand.u32 4294901760, %v1609_v56  ;;  %v1657_v31 = vand.u32 4294901760, %v156_v2  ;;  %v1659_v32 = vand.u32 4294901760, %v186_v6 }
  0x1b   : > { %375 = vmatpush.msra.mxu2 %v1524_v21  ;;  %430 = vmatpush.msra.mxu3 %v1512_v17  ;;  %v299_v36 = vand.u32 4294901760, %v298_v62  ;;  %v310_v37 = vsub.f32 %v1594_v50, %v2379_v1  ;;  %v1666_v38 = vsub.f32 %v158_v54, %v1629_v0  ;;  %v2377_v39 = vand.u32 4294901760, %v1627_v63 }
  0x1c   : > { %219 = vmatpush.msra.mxu0 %v1526_v22  ;;  %276 = vmatpush.msra.mxu1 %v275_v49  ;;  %v1676_v42 = vsub.f32 %v187_v59, %v1640_v8  ;;  %v1678_v43 = vand.u32 4294901760, %v185_v30  ;;  %v305_v47 = vand.u32 4294901760, %v304_v12  ;;  %v316_v48 = vsub.f32 %v1609_v56, %v2378_v29  ;;  %v183_v59 = vld [vmem:[%s2375_s1 + $0xd8] sm:$0xff]  ;;  %v182_v12 = vld [vmem:[%s2375_s1 + $0xd0] sm:$0xff] }
  0x1d   : > { %378 = vmatpush.msra.mxu2 %v1536_v27  ;;  %432 = vmatpush.msra.mxu3 %v1526_v22  ;;  %v1688_v49 = vsub.f32 %v157_v61, %v1649_v18  ;;  %v2380_v53 = vand.u32 4294901760, %v1647_v13  ;;  %v1694_v54 = vsub.f32 %v156_v2, %v1657_v31  ;;  %v322_v61 = vsub.f32 %v1627_v63, %v2377_v39 }
  0x1e   : > { %221 = vmatpush.msra.mxu0 %v1538_v28  ;;  %282 = vmatpush.msra.mxu1 %v281_v55  ;;  %v1697_v55 = vsub.f32 %v186_v6, %v1659_v32  ;;  %v2384_v62 = vand.u32 4294901760, %v1666_v38  ;;  %v1708_v2 = vand.u32 4294901760, %v184_v44  ;;  %v2387_v6 = vand.u32 4294901760, %v1676_v42 }
  0x1f   : > { %381 = vmatpush.msra.mxu2 %v1557_v34  ;;  %434 = vmatpush.msra.mxu3 %v1538_v28  ;;  %v2388_v39 = vand.u32 4294901760, %v1688_v49  ;;  %v1724_v29 = vand.u32 4294901760, %v183_v59  ;;  %v2392_v1 = vand.u32 4294901760, %v1694_v54  ;;  %v1745_v52 = vand.u32 4294901760, %v182_v12 }
  0x20   : > { %223 = vmatpush.msra.mxu0 %v1568_v40  ;;  %288 = vmatpush.msra.mxu1 %v287_v60  ;;  %v311_v60 = vand.u32 4294901760, %v310_v37  ;;  %v328_v37 = vsub.f32 %v1647_v13, %v2380_v53  ;;  %v334_v53 = vsub.f32 %v1666_v38, %v2384_v62  ;;  %v1743_v58 = vsub.f32 %v184_v44, %v1708_v2 }
  0x21   : > { %384 = vmatpush.msra.mxu2 %v1580_v45  ;;  %436 = vmatpush.msra.mxu3 %v1568_v40  ;;  %v628_v41 = vsub.f32 %v1676_v42, %v2387_v6  ;;  %v340_v62 = vsub.f32 %v1688_v49, %v2388_v39  ;;  %v1761_v35 = vsub.f32 %v183_v59, %v1724_v29 }
  0x22   : > { %225 = vmatpush.msra.mxu0 %v1582_v46  ;;  %294 = vmatpush.msra.mxu1 %v293_v7  ;;  %v1714_v7 = vsub.f32 %v185_v30, %v1678_v43  ;;  %v2391_v30 = vand.u32 4294901760, %v1697_v55  ;;  %v329_v44 = vand.u32 4294901760, %v328_v37  ;;  %v179_v37 = vld [vmem:[%s2375_s1 + $0xb8] sm:$0xff]  ;;  %v335_v59 = vand.u32 4294901760, %v334_v53  ;;  %v178_v53 = vld [vmem:[%s2375_s1 + $0xb0] sm:$0xff] }
  0x23   : > { %387 = vmatpush.msra.mxu2 %v1594_v50  ;;  %438 = vmatpush.msra.mxu3 %v1582_v46  ;;  %2401 = vst [vmem:[#allocation2_spill] sm:$0xff] %v1761_v35  ;;  %v1780_v26 = vsub.f32 %v182_v12, %v1745_v52  ;;  %v341_v12 = vand.u32 4294901760, %v340_v62  ;;  %v1798_v14 = vand.u32 4294901760, %v179_v37  ;;  %v2402_v62 = vand.u32 4294901760, %v1743_v58 }
  0x24   : > { %227 = vmatpush.msra.mxu0 %v1596_v51  ;;  %300 = vmatpush.msra.mxu1 %v299_v36  ;;  %v317_v36 = vand.u32 4294901760, %v316_v48  ;;  %v323_v48 = vand.u32 4294901760, %v322_v61  ;;  %v180_v61 = vld [vmem:[%s2375_s1 + $0xc0] sm:$0xff]  ;;  %v634_v6 = vsub.f32 %v1697_v55, %v2391_v30  ;;  %v629_v30 = vand.u32 4294901760, %v628_v41 }
  0x25   : > { %390 = vmatpush.msra.mxu2 %v1609_v56  ;;  %440 = vmatpush.msra.mxu3 %v1596_v51  ;;  %v1782_v25 = vand.u32 4294901760, %v180_v61  ;;  %v646_v15 = vsub.f32 %v1743_v58, %v2402_v62 }
  0x26   : > { %229 = vmatpush.msra.mxu0 %v1611_v57  ;;  %306 = vmatpush.msra.mxu1 %v305_v47  ;;  %v181_v47 = vld [vmem:[%s2375_s1 + $0xc8] sm:$0xff] }
  0x27   : > { %393 = vmatpush.msra.mxu2 %v1627_v63  ;;  %442 = vmatpush.msra.mxu3 %v1611_v57  ;;  %v1763_v33 = vand.u32 4294901760, %v181_v47 }
  0x28   : > { %231 = vmatpush.msra.mxu0 %v1629_v0  ;;  %312 = vmatpush.msra.mxu1 %v311_v60  ;;  %v2393_v60 = vand.u32 4294901760, %v1714_v7 }
  0x29   : > { %396 = vmatpush.msra.mxu2 %v1647_v13  ;;  %444 = vmatpush.msra.mxu3 %v1629_v0  ;;  %v1796_v39 = vsub.f32 %v181_v47, %v1763_v33  ;;  %v1819_v47 = vand.u32 4294901760, %v178_v53 }
  0x2a   : > { %233 = vmatpush.msra.mxu0 %v1649_v18  ;;  %318 = vmatpush.msra.mxu1 %v317_v36  ;;  %v346_v36 = vsub.f32 %v1694_v54, %v2392_v1  ;;  %v640_v1 = vsub.f32 %v1714_v7, %v2393_v60 }
  0x2b   : > { %399 = vmatpush.msra.mxu2 %v1666_v38  ;;  %446 = vmatpush.msra.mxu3 %v1649_v18  ;;  %v1845_v62 = vsub.f32 %v178_v53, %v1819_v47  ;;  %v2407_v53 = vand.u32 4294901760, %v1796_v39 }
  0x2c   : > { %235 = vmatpush.msra.mxu0 %v1657_v31  ;;  %324 = vmatpush.msra.mxu1 %v323_v48  ;;  %v2394_v48 = vand.u32 4294901760, %v1761_v35  ;;  %v347_v41 = vand.u32 4294901760, %v346_v36  ;;  %v2403_v36 = vand.u32 4294901760, %v1510_v16  ;;  %v641_v60 = vand.u32 4294901760, %v640_v1  ;;  %v176_v16 = vld [vmem:[%s2375_s1 + $0xa0] sm:$0xff] }
  0x2d   : > { %402 = vmatpush.msra.mxu2 %v1688_v49  ;;  %448 = vmatpush.msra.mxu3 %v1657_v31  ;;  %v2404_v1 = vand.u32 4294901760, %v1518_v19  ;;  %v1850_v19 = vand.u32 4294901760, %v176_v16 }
  0x2e   : > { %465 = vmatpush.msrb.mxu0 %v255_v23  ;;  %330 = vmatpush.msra.mxu1 %v329_v44  ;;  %v635_v23 = vand.u32 4294901760, %v634_v6  ;;  %v177_v44 = vld [vmem:[%s2375_s1 + $0xa8] sm:$0xff]  ;;  %v1817_v6 = vsub.f32 %v180_v61, %v1782_v25 }
  0x2f   : > { %405 = vmatpush.msra.mxu2 %v1694_v54  ;;  %630 = vmatpush.msrb.mxu3 %v629_v30  ;;  %v1831_v61 = vand.u32 4294901760, %v177_v44  ;;  %v150_v30 = vld [vmem:[%s1809_s16] sm:$0xff] }
  0x30   : > { %469 = vmatpush.msrb.mxu0 %v261_v24  ;;  %336 = vmatpush.msra.mxu1 %v335_v59  ;;  %v652_v59 = vsub.f32 %v1761_v35, %v2394_v48  ;;  %v1829_v24 = vsub.f32 %v179_v37, %v1798_v14  ;;  %v2399_v48 = vand.u32 4294901760, %v1817_v6  ;;  %v2406_v35 = vand.u32 4294901760, %v1521_v20 }
  0x31   : > { %577 = vmatpush.msrb.mxu2 %v1640_v8  ;;  %636 = vmatpush.msrb.mxu3 %v635_v23  ;;  %v1852_v23 = vand.u32 4294901760, %v150_v30 }
  0x32   : > { %473 = vmatpush.msrb.mxu0 %v2403_v36  ;;  %342 = vmatpush.msra.mxu1 %v341_v12  ;;  %v647_v12 = vand.u32 4294901760, %v646_v15  ;;  %v2405_v36 = vand.u32 4294901760, %v1780_v26  ;;  %v653_v15 = vand.u32 4294901760, %v652_v59  ;;  %v2397_v20 = vand.u32 4294901760, %v1829_v24 }
  0x33   : > { %579 = vmatpush.msrb.mxu2 %v1659_v32  ;;  %642 = vmatpush.msrb.mxu3 %v641_v60  ;;  %v670_v59 = vsub.f32 %v1817_v6, %v2399_v48 }
  0x34   : > { %477 = vmatpush.msrb.mxu0 %v2404_v1  ;;  %348 = vmatpush.msra.mxu1 %v347_v41  ;;  %v658_v37 = vsub.f32 %v1780_v26, %v2405_v36  ;;  %v175_v41 = vld [vmem:[%s2375_s1 + $0x98] sm:$0xff]  ;;  %v664_v1 = vsub.f32 %v1796_v39, %v2407_v53  ;;  %v174_v36 = vld [vmem:[%s2375_s1 + $0x90] sm:$0xff] }
  0x35   : > { %581 = vmatpush.msrb.mxu2 %v1678_v43  ;;  %648 = vmatpush.msrb.mxu3 %v647_v12  ;;  %v1876_v53 = vand.u32 4294901760, %v175_v41  ;;  %v173_v12 = vld [vmem:[%s2375_s1 + $0x88] sm:$0xff] }
  0x36   : > { %481 = vmatpush.msrb.mxu0 %v2406_v35  ;;  %536 = vmatpush.msrb.mxu1 %v1474_v3  ;;  %v1863_v3 = vsub.f32 %v177_v44, %v1831_v61  ;;  %v2408_v35 = vand.u32 4294901760, %v1524_v21  ;;  %v659_v60 = vand.u32 4294901760, %v658_v37  ;;  %v2398_v44 = vand.u32 4294901760, %v1845_v62 }
  0x37   : > { %583 = vmatpush.msrb.mxu2 %v1708_v2  ;;  %v2409_v21 = vand.u32 4294901760, %v1536_v27  ;;  %654 = vmatpush.msrb.mxu3 %v653_v15  ;;  %v665_v37 = vand.u32 4294901760, %v664_v1  ;;  %v676_v27 = vsub.f32 %v1829_v24, %v2397_v20  ;;  %v1905_v1 = vsub.f32 %v175_v41, %v1876_v53 }
  0x38   : > { %485 = vmatpush.msrb.mxu0 %v2408_v35  ;;  %538 = vmatpush.msrb.mxu1 %v1476_v4  ;;  %v1882_v4 = vsub.f32 %v150_v30, %v1852_v23  ;;  %v1885_v35 = vsub.f32 %v176_v16, %v1850_v19  ;;  %v1895_v30 = vand.u32 4294901760, %v174_v36  ;;  %v2410_v16 = vand.u32 4294901760, %v1557_v34  ;;  %v172_v34 = vld [vmem:[%s2375_s1 + $0x80] sm:$0xff] }
  0x39   : > { %585 = vmatpush.msrb.mxu2 %v1724_v29  ;;  %660 = vmatpush.msrb.mxu3 %v659_v60  ;;  %v682_v15 = vsub.f32 %v1845_v62, %v2398_v44  ;;  %v1907_v20 = vand.u32 4294901760, %v173_v12  ;;  %v677_v41 = vand.u32 4294901760, %v676_v27  ;;  %v699_v27 = vand.u32 4294901760, %v1905_v1 }
  0x3a   : > { %489 = vmatpush.msrb.mxu0 %v2409_v21  ;;  %540 = vmatpush.msrb.mxu1 %v1478_v5  ;;  %v2400_v5 = vand.u32 4294901760, %v1863_v3  ;;  %v671_v21 = vand.u32 4294901760, %v670_v59  ;;  %v693_v60 = vand.u32 4294901760, %v1885_v35  ;;  %v238_v59 = vand.u32 4294901760, %v1882_v4 }
  0x3b   : > { %587 = vmatpush.msrb.mxu2 %v1745_v52  ;;  %666 = vmatpush.msrb.mxu3 %v665_v37  ;;  %v1923_v48 = vsub.f32 %v174_v36, %v1895_v30  ;;  %v683_v37 = vand.u32 4294901760, %v682_v15  ;;  %v2413_v36 = vand.u32 4294901760, %v1609_v56 }
  0x3c   : > { %493 = vmatpush.msrb.mxu0 %v2410_v16  ;;  %542 = vmatpush.msrb.mxu1 %v1489_v9  ;;  %v153_v16 = vld [vmem:[%s1809_s16 + $0x18] sm:$0xff]  ;;  %v2411_v9 = vand.u32 4294901760, %v1580_v45  ;;  %v688_v44 = vsub.f32 %v1863_v3, %v2400_v5  ;;  %v2412_v45 = vand.u32 4294901760, %v1594_v50  ;;  %v1935_v5 = vsub.f32 %v173_v12, %v1907_v20 }
  0x3d   : > { %589 = vmatpush.msrb.mxu2 %v1763_v33  ;;  %672 = vmatpush.msrb.mxu3 %v671_v21  ;;  %v239_v50 = vsub.f32 %v1882_v4, %v238_v59  ;;  %v705_v15 = vand.u32 4294901760, %v1923_v48  ;;  %v2414_v12 = vand.u32 4294901760, %v1627_v63  ;;  %v2415_v63 = vand.u32 4294901760, %v1647_v13 }
  0x3e   : > { %497 = vmatpush.msrb.mxu0 %v2411_v9  ;;  %544 = vmatpush.msrb.mxu1 %v1491_v10  ;;  %v1928_v10 = vand.u32 4294901760, %v172_v34  ;;  %v1930_v9 = vand.u32 4294901760, %v153_v16  ;;  %v689_v21 = vand.u32 4294901760, %v688_v44  ;;  %v711_v44 = vand.u32 4294901760, %v1935_v5 }
  0x3f   : > { %591 = vmatpush.msrb.mxu2 %v1782_v25  ;;  %678 = vmatpush.msrb.mxu3 %v677_v41  ;;  %v700_v41 = vsub.f32 %v1905_v1, %v699_v27 }
  0x40   : > { %501 = vmatpush.msrb.mxu0 %v2412_v45  ;;  %546 = vmatpush.msrb.mxu1 %v1493_v11  ;;  %v694_v11 = vsub.f32 %v1885_v35, %v693_v60  ;;  %v245_v56 = vsub.f32 %v153_v16, %v1930_v9  ;;  %v151_v45 = vld [vmem:[%s1809_s16 + $0x8] sm:$0xff]  ;;  %v240_v16 = vand.u32 4294901760, %v239_v50 }
  0x41   : > { %593 = vmatpush.msrb.mxu2 %v1798_v14  ;;  %684 = vmatpush.msrb.mxu3 %v683_v37  ;;  %v2416_v37 = vand.u32 4294901760, %v1666_v38  ;;  %v2417_v38 = vand.u32 4294901760, %v1688_v49  ;;  %v2418_v49 = vand.u32 4294901760, %v1694_v54  ;;  %v2419_v54 = vand.u32 4294901760, %v1676_v42 }
  0x42   : > { %505 = vmatpush.msrb.mxu0 %v2413_v36  ;;  %548 = vmatpush.msrb.mxu1 %v1512_v17  ;;  %v1951_v17 = vsub.f32 %v172_v34, %v1928_v10  ;;  %v706_v34 = vsub.f32 %v1923_v48, %v705_v15  ;;  %v246_v13 = vand.u32 4294901760, %v245_v56 }
  0x43   : > { %595 = vmatpush.msrb.mxu2 %v1819_v47  ;;  %690 = vmatpush.msrb.mxu3 %v689_v21 }
  0x44   : > { %509 = vmatpush.msrb.mxu0 %v2414_v12  ;;  %550 = vmatpush.msrb.mxu1 %v1526_v22  ;;  %v695_v22 = vand.u32 4294901760, %v694_v11  ;;  %v717_v36 = vand.u32 4294901760, %v1951_v17  ;;  %v1970_v12 = vand.u32 4294901760, %v151_v45  ;;  %v712_v11 = vsub.f32 %v1935_v5, %v711_v44 }
  0x45   : > { %597 = vmatpush.msrb.mxu2 %v1831_v61  ;;  %241 = vmatmul.f32.vlgmr.msra.gmra.mxu0 %v240_v16  ;;  %v247_v50 = vsub.f32 %v245_v56, %v246_v13  ;;  %v196_v16 = vld [vmem:[%s2375_s1 + $0x140] sm:$0xff] }
  0x46   : > { %513 = vmatpush.msrb.mxu0 %v2415_v63  ;;  %552 = vmatpush.msrb.mxu1 %v1538_v28  ;;  %v701_v28 = vand.u32 4294901760, %v700_v41  ;;  %v1985_v21 = vsub.f32 %v151_v45, %v1970_v12  ;;  %v2422_v63 = vld [vmem:[#allocation2_spill] sm:$0xff] }
  0x47   : > { %599 = vmatpush.msrb.mxu2 %v1850_v19  ;;  %696 = vmatpush.msrb.mxu3 %v695_v22  ;;  %v248_v41 = vand.u32 4294901760, %v247_v50 }
  0x48   : > { %408 = vmatmul.f32.vlgmr.msra.gmra.mxu2 %v1882_v4  ;;  %517 = vmatpush.msrb.mxu0 %v2416_v37  ;;  %v707_v4 = vand.u32 4294901760, %v706_v34  ;;  %v610_v45 = vand.u32 4294901760, %v1985_v21  ;;  %v195_v37 = vld [vmem:[%s2375_s1 + $0x138] sm:$0xff] }
  0x49   : > { %554 = vmatpush.msrb.mxu1 %v1568_v40  ;;  %601 = vmatpush.msrb.mxu2 %v1876_v53  ;;  %v718_v40 = vsub.f32 %v1951_v17, %v717_v36 }
  0x4a   : > { %452 = vmatmul.f32.vlgmr.msra.gmra.mxu3 %v238_v59  ;;  %521 = vmatpush.msrb.mxu0 %v2417_v38  ;;  %v713_v59 = vand.u32 4294901760, %v712_v11 }
  0x4b   : > { %556 = vmatpush.msrb.mxu1 %v1582_v46  ;;  %603 = vmatpush.msrb.mxu2 %v1895_v30  ;;  %v719_v46 = vand.u32 4294901760, %v718_v40  ;;  %v194_v40 = vld [vmem:[%s2375_s1 + $0x130] sm:$0xff] }
  0x4c   : > { %702 = vmatpush.msrb.mxu3 %v701_v28  ;;  %350 = vmatmul.f32.vlgmr.msra.gmra.mxu1 %v1852_v23 }
  0x4d   : > { %525 = vmatpush.msrb.mxu0 %v2418_v49  ;;  %558 = vmatpush.msrb.mxu1 %v1596_v51  ;;  %v611_v51 = vsub.f32 %v1985_v21, %v610_v45 }
  0x4e   : > { %605 = vmatpush.msrb.mxu2 %v1907_v20  ;;  %708 = vmatpush.msrb.mxu3 %v707_v4 }
  0x4f   : > { %732 = vmatpush.msra.mxu0 %v1676_v42  ;;  %560 = vmatpush.msrb.mxu1 %v1611_v57  ;;  %v2420_v57 = vand.u32 4294901760, %v1697_v55  ;;  %v612_v42 = vand.u32 4294901760, %v611_v51 }
  0x50   : > { %607 = vmatpush.msrb.mxu2 %v1928_v10  ;;  %714 = vmatpush.msrb.mxu3 %v713_v59  ;;  %v193_v59 = vld [vmem:[%s2375_s1 + $0x128] sm:$0xff] }
  0x51   : > { %413 = vmatmul.f32.gmra.mxu2 %v245_v56  ;;  %735 = vmatpush.msra.mxu0 %v1697_v55  ;;  %v154_v56 = vld [vmem:[%s1809_s16 + $0x20] sm:$0xff]  ;;  %v2423_v55 = vand.u32 4294901760, %v1743_v58 }
  0x52   : > { %837 = vmatpush.msra.mxu2 %v2419_v54  ;;  %562 = vmatpush.msrb.mxu1 %v1629_v0  ;;  %v2421_v0 = vand.u32 4294901760, %v1714_v7 }
  0x53   : > { %720 = vmatpush.msrb.mxu3 %v719_v46  ;;  %249 = vmatmul.f32.gmra.mxu0 %v248_v41  ;;  %v2185_v41 = vand.u32 4294901760, %v194_v40 }
  0x54   : > { %458 = vmatmul.f32.gmra.mxu3 %v246_v13  ;;  %738 = vmatpush.msra.mxu0 %v1714_v7  ;;  %v2424_v7 = vand.u32 4294901760, %v2422_v63  ;;  %v2160_v13 = vand.u32 4294901760, %v196_v16 }
  0x55   : > { %841 = vmatpush.msra.mxu2 %v2420_v57  ;;  %908 = vmatpush.msra.mxu3 %v1640_v8  ;;  %v2196_v57 = vand.u32 4294901760, %v193_v59 }
  0x56   : > { %564 = vmatpush.msrb.mxu1 %v1649_v18  ;;  %741 = vmatpush.msra.mxu0 %v1743_v58  ;;  %v2021_v18 = vand.u32 4294901760, %v154_v56  ;;  %v2425_v58 = vand.u32 4294901760, %v1780_v26  ;;  %v1040_v46 = vsub.f32 %v196_v16, %v2160_v13  ;;  %v155_v16 = vld [vmem:[%s1809_s16 + $0x28] sm:$0xff] }
  0x57   : > { %354 = vmatmul.f32.gmra.mxu1 %v1930_v9  ;;  %845 = vmatpush.msra.mxu2 %v2421_v0 }
  0x58   : > { %910 = vmatpush.msra.mxu3 %v1659_v32  ;;  %566 = vmatpush.msrb.mxu1 %v1657_v31  ;;  %v2426_v31 = vand.u32 4294901760, %v1796_v39 }
  0x59   : > { %744 = vmatpush.msra.mxu0 %v2422_v63  ;;  %849 = vmatpush.msra.mxu2 %v2423_v55  ;;  %v2205_v63 = vand.u32 4294901760, %v1040_v46 }
  0x5a   : > { %790 = vmatpush.msra.mxu1 %v1640_v8  ;;  %912 = vmatpush.msra.mxu3 %v1678_v43  ;;  %v2034_v8 = vsub.f32 %v154_v56, %v2021_v18  ;;  %v152_v56 = vld [vmem:[%s1809_s16 + $0x10] sm:$0xff]  ;;  %s1390_s16 = sshll.u32 %s2432_s23, 3 }
  0x5b   : > { %613 = vmatmul.f32.vlgmr.msrb.gmra.mxu2 %v612_v42  ;;  %747 = vmatpush.msra.mxu0 %v1780_v26  ;;  %v191_v42 = vld [vmem:[%s2375_s1 + $0x118] sm:$0xff]  ;;  %s148_s8 = scalar_lea.vmem %s2376_s2, %s1390_s16 }
  0x5c   : > { %792 = vmatpush.msra.mxu1 %v1659_v32  ;;  %853 = vmatpush.msra.mxu2 %v2424_v7  ;;  %v618_v26 = vand.u32 4294901760, %v2034_v8  ;;  %v2427_v32 = vand.u32 4294901760, %v1817_v6  ;;  %v1052_v7 = vsub.f32 %v194_v40, %v2185_v41  ;;  %v2267_v40 = vand.u32 4294901760, %v155_v16 }
  0x5d   : > { %914 = vmatpush.msra.mxu3 %v1708_v2  ;;  %527 = vmatmul.f32.vlgmr.msrb.gmra.mxu0 %v1852_v23 }
  0x5e   : > { %722 = vmatmul.f32.vlgmr.msrb.gmra.mxu3 %v1970_v12  ;;  %750 = vmatpush.msra.mxu0 %v1796_v39  ;;  %v2428_v39 = vand.u32 4294901760, %v1829_v24 }
  0x5f   : > { %794 = vmatpush.msra.mxu1 %v1678_v43  ;;  %857 = vmatpush.msra.mxu2 %v2425_v58  ;;  %v2429_v43 = vand.u32 4294901760, %v1845_v62 }
  0x60   : > { %916 = vmatpush.msra.mxu3 %v1724_v29  ;;  %568 = vmatmul.f32.vlgmr.msrb.gmra.mxu1 %v1852_v23 }
  0x61   : > { %753 = vmatpush.msra.mxu0 %v1817_v6  ;;  %796 = vmatpush.msra.mxu1 %v1708_v2  ;;  %v2430_v2 = vand.u32 4294901760, %v1863_v3 }
  0x62   : > { %861 = vmatpush.msra.mxu2 %v2426_v31  ;;  %918 = vmatpush.msra.mxu3 %v1745_v52 }
  0x63   : > { %756 = vmatpush.msra.mxu0 %v1829_v24  ;;  %798 = vmatpush.msra.mxu1 %v1724_v29  ;;  %v619_v29 = vsub.f32 %v2034_v8, %v618_v26  ;;  %v202_v24 = vld [vmem:[%s2375_s1 + $0x170] sm:$0xff] }
  0x64   : > { %865 = vmatpush.msra.mxu2 %v2427_v32  ;;  %920 = vmatpush.msra.mxu3 %v1763_v33  ;;  %v2088_v6 = vand.u32 4294901760, %v202_v24 }
  0x65   : > { %759 = vmatpush.msra.mxu0 %v1845_v62  ;;  %800 = vmatpush.msra.mxu1 %v1745_v52  ;;  %v203_v52 = vld [vmem:[%s2375_s1 + $0x178] sm:$0xff]  ;;  %v200_v62 = vld [vmem:[%s2375_s1 + $0x160] sm:$0xff] }
  0x66   : > { %869 = vmatpush.msra.mxu2 %v2428_v39  ;;  %922 = vmatpush.msra.mxu3 %v1782_v25 }
  0x67   : > { %762 = vmatpush.msra.mxu0 %v1863_v3  ;;  %802 = vmatpush.msra.mxu1 %v1763_v33  ;;  %v620_v33 = vand.u32 4294901760, %v619_v29  ;;  %v199_v3 = vld [vmem:[%s2375_s1 + $0x158] sm:$0xff]  ;;  %v1058_v29 = vsub.f32 %v193_v59, %v2196_v57 }
  0x68   : > { %873 = vmatpush.msra.mxu2 %v2429_v43  ;;  %924 = vmatpush.msra.mxu3 %v1798_v14  ;;  %v2217_v43 = vand.u32 4294901760, %v191_v42 }
  0x69   : > { %765 = vmatpush.msra.mxu0 %v1885_v35  ;;  %804 = vmatpush.msra.mxu1 %v1782_v25  ;;  %v2078_v25 = vand.u32 4294901760, %v203_v52  ;;  %v1004_v35 = vsub.f32 %v202_v24, %v2088_v6  ;;  %v2226_v24 = vand.u32 4294901760, %v1052_v7 }
  0x6a   : > { %877 = vmatpush.msra.mxu2 %v2430_v2  ;;  %926 = vmatpush.msra.mxu3 %v1819_v47  ;;  %v2222_v2 = vand.u32 4294901760, %v152_v56 }
  0x6b   : > { %531 = vmatmul.f32.gmra.mxu0 %v1930_v9  ;;  %806 = vmatpush.msra.mxu1 %v1798_v14  ;;  %v201_v14 = vld [vmem:[%s2375_s1 + $0x168] sm:$0xff] }
  0x6c   : > { %768 = vmatpush.msra.mxu0 %v1905_v1  ;;  %881 = vmatpush.msra.mxu2 %v693_v60  ;;  %v2097_v23 = vand.u32 4294901760, %v201_v14  ;;  %v2118_v60 = vand.u32 4294901760, %v199_v3 }
  0x6d   : > { %928 = vmatpush.msra.mxu3 %v1831_v61  ;;  %808 = vmatpush.msra.mxu1 %v1819_v47  ;;  %v998_v47 = vsub.f32 %v203_v52, %v2078_v25  ;;  %v190_v52 = vld [vmem:[%s2375_s1 + $0x110] sm:$0xff] }
  0x6e   : > { %771 = vmatpush.msra.mxu0 %v1923_v48  ;;  %885 = vmatpush.msra.mxu2 %v699_v27  ;;  %v1010_v1 = vsub.f32 %v201_v14, %v2097_v23  ;;  %v198_v27 = vld [vmem:[%s2375_s1 + $0x150] sm:$0xff]  ;;  %v1042_v14 = vsub.f32 %v1040_v46, %v2205_v63 }
  0x6f   : > { %930 = vmatpush.msra.mxu3 %v1850_v19  ;;  %621 = vmatmul.f32.gmra.mxu2 %v620_v33  ;;  %v2115_v48 = vand.u32 4294901760, %v998_v47 }
  0x70   : > { %774 = vmatpush.msra.mxu0 %v1935_v5  ;;  %810 = vmatpush.msra.mxu1 %v1831_v61  ;;  %v2108_v61 = vand.u32 4294901760, %v200_v62  ;;  %v2131_v5 = vand.u32 4294901760, %v1004_v35 }
  0x71   : > { %889 = vmatpush.msra.mxu2 %v705_v15  ;;  %932 = vmatpush.msra.mxu3 %v1876_v53  ;;  %v2135_v15 = vand.u32 4294901760, %v198_v27 }
  0x72   : > { %726 = vmatmul.f32.gmra.mxu3 %v2021_v18  ;;  %777 = vmatpush.msra.mxu0 %v1951_v17  ;;  %v1022_v17 = vsub.f32 %v199_v3, %v2118_v60  ;;  %v1006_v34 = vsub.f32 %v1004_v35, %v2131_v5  ;;  %v2233_v3 = vand.u32 4294901760, %v190_v52 }
  0x73   : > { %812 = vmatpush.msra.mxu1 %v1850_v19  ;;  %893 = vmatpush.msra.mxu2 %v711_v44  ;;  %v197_v19 = vld [vmem:[%s2375_s1 + $0x148] sm:$0xff]  ;;  %v1000_v44 = vsub.f32 %v998_v47, %v2115_v48 }
  0x74   : > { %934 = vmatpush.msra.mxu3 %v1895_v30  ;;  %572 = vmatmul.f32.gmra.mxu1 %v1930_v9  ;;  %v1016_v9 = vsub.f32 %v200_v62, %v2108_v61  ;;  %v2143_v22 = vand.u32 4294901760, %v197_v19  ;;  %v2164_v11 = vand.u32 4294901760, %v1022_v17 }
  0x75   : > { %780 = vmatmul.f32.vlgmr.msra.gmra.mxu0 %v1985_v21  ;;  %814 = vmatpush.msra.mxu1 %v1876_v53  ;;  %v2139_v53 = vand.u32 4294901760, %v1010_v1  ;;  %v1001_v28 = vand.u32 4294901760, %v1000_v44  ;;  %v192_v21 = vld [vmem:[%s2375_s1 + $0x120] sm:$0xff] }
  0x76   : > { %949 = vmatpush.msrb.mxu0 %v2078_v25  ;;  %897 = vmatpush.msra.mxu2 %v717_v36  ;;  %v1028_v36 = vsub.f32 %v198_v27, %v2135_v15  ;;  %v1034_v4 = vsub.f32 %v197_v19, %v2143_v22  ;;  %v1024_v51 = vsub.f32 %v1022_v17, %v2164_v11  ;;  %v2209_v58 = vand.u32 4294901760, %v192_v21 }
  0x77   : > { %936 = vmatpush.msra.mxu3 %v1907_v20  ;;  %816 = vmatpush.msra.mxu1 %v1895_v30  ;;  %v2151_v30 = vand.u32 4294901760, %v1016_v9  ;;  %v1012_v38 = vsub.f32 %v1010_v1, %v2139_v53  ;;  %v1070_v27 = vsub.f32 %v191_v42, %v2217_v43 }
  0x78   : > { %1104 = vmatpush.msrb.mxu2 %v998_v47  ;;  %951 = vmatpush.msrb.mxu0 %v2088_v6  ;;  %v2182_v49 = vand.u32 4294901760, %v1028_v36  ;;  %v2188_v54 = vand.u32 4294901760, %v1034_v4  ;;  %v1025_v31 = vand.u32 4294901760, %v1024_v51  ;;  %v1064_v62 = vsub.f32 %v192_v21, %v2209_v58 }
  0x79   : > { %938 = vmatpush.msra.mxu3 %v1928_v10  ;;  %899 = vmatmul.f32.vlgmr.msra.gmra.mxu2 %v1970_v12  ;;  %v1018_v50 = vsub.f32 %v1016_v9, %v2151_v30 }
  0x7a   : > { %953 = vmatpush.msrb.mxu0 %v2097_v23  ;;  %1107 = vmatpush.msrb.mxu2 %v1004_v35  ;;  %v1030_v55 = vsub.f32 %v1028_v36, %v2182_v49  ;;  %v1036_v32 = vsub.f32 %v1034_v4, %v2188_v54  ;;  %v2239_v35 = vand.u32 4294901760, %v1058_v29  ;;  %v2248_v19 = vand.u32 4294901760, %v1064_v62 }
  0x7b   : > { %1162 = vmatpush.msrb.mxu3 %v2078_v25  ;;  %818 = vmatpush.msra.mxu1 %v1907_v20  ;;  %v2172_v20 = vand.u32 4294901760, %v195_v37  ;;  %v1019_v0 = vand.u32 4294901760, %v1018_v50 }
  0x7c   : > { %940 = vmatmul.f32.vlgmr.msra.gmra.mxu3 %v1970_v12  ;;  %955 = vmatpush.msrb.mxu0 %v2108_v61  ;;  %v1007_v12 = vand.u32 4294901760, %v1006_v34  ;;  %v1031_v33 = vand.u32 4294901760, %v1030_v55  ;;  %v1037_v47 = vand.u32 4294901760, %v1036_v32  ;;  %v1076_v34 = vsub.f32 %v190_v52, %v2233_v3 }
  0x7d   : > { %1110 = vmatpush.msrb.mxu2 %v1010_v1  ;;  %1164 = vmatpush.msrb.mxu3 %v2088_v6  ;;  %v1066_v50 = vsub.f32 %v1064_v62, %v2248_v19 }
  0x7e   : > { %820 = vmatpush.msra.mxu1 %v1928_v10  ;;  %957 = vmatpush.msrb.mxu0 %v2118_v60  ;;  %v1013_v10 = vand.u32 4294901760, %v1012_v38 }
  0x7f   : > { %824 = vmatmul.f32.vlgmr.msra.gmra.mxu1 %v610_v45  ;;  %1113 = vmatpush.msrb.mxu2 %v1016_v9  ;;  %v1046_v45 = vsub.f32 %v195_v37, %v2172_v20  ;;  %v1054_v9 = vsub.f32 %v1052_v7, %v2226_v24  ;;  %v1067_v42 = vand.u32 4294901760, %v1066_v50 }
  0x80   : > { %1002 = vmatpush.msrb.mxu1 %v1001_v28  ;;  %1166 = vmatpush.msrb.mxu3 %v2097_v23  ;;  %v1060_v28 = vsub.f32 %v1058_v29, %v2239_v35 }
  0x81   : > { %959 = vmatpush.msrb.mxu0 %v2135_v15  ;;  %1116 = vmatpush.msrb.mxu2 %v1022_v17  ;;  %v2214_v39 = vand.u32 4294901760, %v1046_v45  ;;  %v188_v17 = vld [vmem:[%s2375_s1 + $0x100] sm:$0xff] }
  0x82   : > { %1008 = vmatpush.msrb.mxu1 %v1007_v12  ;;  %1168 = vmatpush.msrb.mxu3 %v2108_v61  ;;  %v1055_v12 = vand.u32 4294901760, %v1054_v9 }
  0x83   : > { %785 = vmatmul.f32.gmra.mxu0 %v2034_v8  ;;  %903 = vmatmul.f32.gmra.mxu2 %v2021_v18  ;;  %v1048_v1 = vsub.f32 %v1046_v45, %v2214_v39  ;;  %v2244_v8 = vsub.f32 %v152_v56, %v2222_v2 }
  0x84   : > { %961 = vmatpush.msrb.mxu0 %v2143_v22  ;;  %1014 = vmatpush.msrb.mxu1 %v1013_v10  ;;  %v1061_v10 = vand.u32 4294901760, %v1060_v28 }
  0x85   : > { %1119 = vmatpush.msrb.mxu2 %v1028_v36  ;;  %1170 = vmatpush.msrb.mxu3 %v2118_v60  ;;  %v1049_v37 = vand.u32 4294901760, %v1048_v1  ;;  %v2260_v36 = vand.u32 4294901760, %v1070_v27  ;;  %v982_v38 = vand.u32 4294901760, %v2244_v8 }
  0x86   : > { %944 = vmatmul.f32.gmra.mxu3 %v2021_v18  ;;  %963 = vmatpush.msrb.mxu0 %v2160_v13  ;;  %v189_v18 = vld [vmem:[%s2375_s1 + $0x108] sm:$0xff] }
  0x87   : > { %1020 = vmatpush.msrb.mxu1 %v1019_v0  ;;  %1122 = vmatpush.msrb.mxu2 %v1034_v4  ;;  %v2251_v44 = vand.u32 4294901760, %v189_v18  ;;  %v2265_v4 = vand.u32 4294901760, %v188_v17  ;;  %v983_v51 = vsub.f32 %v2244_v8, %v982_v38  ;;  %v1072_v21 = vsub.f32 %v1070_v27, %v2260_v36 }
  0x88   : > { %1172 = vmatpush.msrb.mxu3 %v2135_v15  ;;  %830 = vmatmul.f32.gmra.mxu1 %v618_v26  ;;  %v1043_v26 = vand.u32 4294901760, %v1042_v14  ;;  %v989_v0 = vsub.f32 %v155_v16, %v2267_v40 }
  0x89   : > { %965 = vmatpush.msrb.mxu0 %v2172_v20  ;;  %1026 = vmatpush.msrb.mxu1 %v1025_v31  ;;  %v1082_v59 = vsub.f32 %v189_v18, %v2251_v44  ;;  %v1073_v31 = vand.u32 4294901760, %v1072_v21 }
  0x8a   : > { %1125 = vmatpush.msrb.mxu2 %v1040_v46  ;;  %1174 = vmatpush.msrb.mxu3 %v2143_v22  ;;  %v2273_v46 = vand.u32 4294901760, %v1076_v34 }
  0x8b   : > { %967 = vmatpush.msrb.mxu0 %v2185_v41  ;;  %1032 = vmatpush.msrb.mxu1 %v1031_v33  ;;  %v2282_v56 = vand.u32 4294901760, %v1082_v59 }
  0x8c   : > { %1128 = vmatpush.msrb.mxu2 %v1046_v45  ;;  %1176 = vmatpush.msrb.mxu3 %v2160_v13  ;;  %v1088_v45 = vsub.f32 %v188_v17, %v2265_v4  ;;  %v1078_v55 = vsub.f32 %v1076_v34, %v2273_v46 }
  0x8d   : > { %969 = vmatpush.msrb.mxu0 %v2196_v57  ;;  %1038 = vmatpush.msrb.mxu1 %v1037_v47  ;;  %v1084_v52 = vsub.f32 %v1082_v59, %v2282_v56 }
  0x8e   : > { %1131 = vmatpush.msrb.mxu2 %v1052_v7  ;;  %1178 = vmatpush.msrb.mxu3 %v2172_v20  ;;  %v984_v7 = vand.u32 4294901760, %v983_v51  ;;  %v2288_v32 = vand.u32 4294901760, %v1088_v45  ;;  %v1079_v33 = vand.u32 4294901760, %v1078_v55 }
  0x8f   : > { %971 = vmatpush.msrb.mxu0 %v2209_v58  ;;  %1044 = vmatpush.msrb.mxu1 %v1043_v26  ;;  %v1085_v47 = vand.u32 4294901760, %v1084_v52 }
  0x90   : > { %1134 = vmatpush.msrb.mxu2 %v1058_v29  ;;  %1180 = vmatpush.msrb.mxu3 %v2185_v41  ;;  %v990_v29 = vand.u32 4294901760, %v989_v0  ;;  %v1090_v14 = vsub.f32 %v1088_v45, %v2288_v32 }
  0x91   : > { %973 = vmatpush.msrb.mxu0 %v2217_v43  ;;  %1050 = vmatpush.msrb.mxu1 %v1049_v37 }
  0x92   : > { %1137 = vmatpush.msrb.mxu2 %v1064_v62  ;;  %1182 = vmatpush.msrb.mxu3 %v2196_v57  ;;  %v991_v62 = vsub.f32 %v989_v0, %v990_v29  ;;  %v1091_v18 = vand.u32 4294901760, %v1090_v14 }
  0x93   : > { %975 = vmatpush.msrb.mxu0 %v2233_v3  ;;  %1056 = vmatpush.msrb.mxu1 %v1055_v12 }
  0x94   : > { %1140 = vmatpush.msrb.mxu2 %v1070_v27  ;;  %1184 = vmatpush.msrb.mxu3 %v2209_v58  ;;  %v992_v1 = vand.u32 4294901760, %v991_v62 }
  0x95   : > { %977 = vmatpush.msrb.mxu0 %v2251_v44  ;;  %1062 = vmatpush.msrb.mxu1 %v1061_v10 }
  0x96   : > { %1143 = vmatpush.msrb.mxu2 %v1076_v34  ;;  %1186 = vmatpush.msrb.mxu3 %v2217_v43 }
  0x97   : > { %979 = vmatpush.msrb.mxu0 %v2265_v4  ;;  %1068 = vmatpush.msrb.mxu1 %v1067_v42 }
  0x98   : > { %1146 = vmatpush.msrb.mxu2 %v1082_v59  ;;  %1188 = vmatpush.msrb.mxu3 %v2233_v3 }
  0x99   : > { %985 = vmatmul.f32.vlgmr.msrb.gmra.mxu0 %v984_v7  ;;  %1074 = vmatpush.msrb.mxu1 %v1073_v31 }
  0x9a   : > { %1209 = vmatpush.msra.mxu0 %v2115_v48  ;;  %1149 = vmatpush.msrb.mxu2 %v1088_v45 }
  0x9b   : > { %1190 = vmatpush.msrb.mxu3 %v2251_v44  ;;  %1080 = vmatpush.msrb.mxu1 %v1079_v33 }
  0x9c   : > { %1393 = vmatpush.msra.mxu2 %v2115_v48  ;;  %1213 = vmatpush.msra.mxu0 %v2131_v5 }
  0x9d   : > { %1192 = vmatpush.msrb.mxu3 %v2265_v4  ;;  %1152 = vmatmul.f32.vlgmr.msrb.gmra.mxu2 %v2244_v8 }
  0x9e   : > { %1394 = vmatpush.msra.mxu2 %v2131_v5  ;;  %1217 = vmatpush.msra.mxu0 %v2139_v53 }
  0x9f   : > { %1409 = vmatpush.msra.mxu3 %v2078_v25  ;;  %1086 = vmatpush.msrb.mxu1 %v1085_v47 }
  0xa0   : > { %1196 = vmatmul.f32.vlgmr.msrb.gmra.mxu3 %v982_v38  ;;  %1395 = vmatpush.msra.mxu2 %v2139_v53 }
  0xa1   : > { %1221 = vmatpush.msra.mxu0 %v2151_v30  ;;  %1410 = vmatpush.msra.mxu3 %v2088_v6 }
  0xa2   : > { %1092 = vmatpush.msrb.mxu1 %v1091_v18  ;;  %993 = vmatmul.f32.gmra.mxu0 %v992_v1 }
  0xa3   : > { %1094 = vmatmul.f32.vlgmr.msrb.gmra.mxu1 %v2222_v2  ;;  %1396 = vmatpush.msra.mxu2 %v2151_v30 }
  0xa4   : > { %1225 = vmatpush.msra.mxu0 %v2164_v11  ;;  %1280 = vmatpush.msra.mxu1 %v2078_v25 }
  0xa5   : > { %1411 = vmatpush.msra.mxu3 %v2097_v23  ;;  %1397 = vmatpush.msra.mxu2 %v2164_v11 }
  0xa6   : > { %1229 = vmatpush.msra.mxu0 %v2182_v49  ;;  %1282 = vmatpush.msra.mxu1 %v2088_v6 }
  0xa7   : > { %1412 = vmatpush.msra.mxu3 %v2108_v61  ;;  %1157 = vmatmul.f32.gmra.mxu2 %v989_v0 }
  0xa8   : > { %1398 = vmatpush.msra.mxu2 %v2182_v49  ;;  %1233 = vmatpush.msra.mxu0 %v2188_v54 }
  0xa9   : > { %1284 = vmatpush.msra.mxu1 %v2097_v23  ;;  %1413 = vmatpush.msra.mxu3 %v2118_v60 }
  0xaa   : > { %1202 = vmatmul.f32.gmra.mxu3 %v990_v29  ;;  %1399 = vmatpush.msra.mxu2 %v2188_v54 }
  0xab   : > { %1237 = vmatpush.msra.mxu0 %v2205_v63  ;;  %1286 = vmatpush.msra.mxu1 %v2108_v61 }
  0xac   : > { %1414 = vmatpush.msra.mxu3 %v2135_v15  ;;  %1098 = vmatmul.f32.gmra.mxu1 %v2267_v40 }
  0xad   : > { %1400 = vmatpush.msra.mxu2 %v2205_v63  ;;  %1241 = vmatpush.msra.mxu0 %v2214_v39 }
  0xae   : > { %1288 = vmatpush.msra.mxu1 %v2118_v60  ;;  %1415 = vmatpush.msra.mxu3 %v2143_v22 }
  0xaf   : > { %1401 = vmatpush.msra.mxu2 %v2214_v39  ;;  %1245 = vmatpush.msra.mxu0 %v2226_v24 }
  0xb0   : > { %1290 = vmatpush.msra.mxu1 %v2135_v15  ;;  %1416 = vmatpush.msra.mxu3 %v2160_v13 }
  0xb1   : > { %1402 = vmatpush.msra.mxu2 %v2226_v24  ;;  %1249 = vmatpush.msra.mxu0 %v2239_v35 }
  0xb2   : > { %1292 = vmatpush.msra.mxu1 %v2143_v22  ;;  %1417 = vmatpush.msra.mxu3 %v2172_v20 }
  0xb3   : > { %1403 = vmatpush.msra.mxu2 %v2239_v35  ;;  %1253 = vmatpush.msra.mxu0 %v2248_v19 }
  0xb4   : > { %1294 = vmatpush.msra.mxu1 %v2160_v13  ;;  %1418 = vmatpush.msra.mxu3 %v2185_v41 }
  0xb5   : > { %1404 = vmatpush.msra.mxu2 %v2248_v19  ;;  %1257 = vmatpush.msra.mxu0 %v2260_v36 }
  0xb6   : > { %1296 = vmatpush.msra.mxu1 %v2172_v20  ;;  %1419 = vmatpush.msra.mxu3 %v2196_v57 }
  0xb7   : > { %1405 = vmatpush.msra.mxu2 %v2260_v36  ;;  %1261 = vmatpush.msra.mxu0 %v2273_v46 }
  0xb8   : > { %1298 = vmatpush.msra.mxu1 %v2185_v41  ;;  %1420 = vmatpush.msra.mxu3 %v2209_v58 }
  0xb9   : > { %1406 = vmatpush.msra.mxu2 %v2273_v46  ;;  %1265 = vmatpush.msra.mxu0 %v2282_v56 }
  0xba   : > { %1300 = vmatpush.msra.mxu1 %v2196_v57  ;;  %1421 = vmatpush.msra.mxu3 %v2217_v43 }
  0xbb   : > { %1407 = vmatpush.msra.mxu2 %v2282_v56  ;;  %1269 = vmatpush.msra.mxu0 %v2288_v32 }
  0xbc   : > { %1302 = vmatpush.msra.mxu1 %v2209_v58  ;;  %1422 = vmatpush.msra.mxu3 %v2233_v3 }
  0xbd   : > { %1271 = vmatmul.f32.vlgmr.msra.gmra.mxu0 %v2222_v2  ;;  %1408 = vmatpush.msra.mxu2 %v2288_v32 }
  0xbe   : > { %1304 = vmatpush.msra.mxu1 %v2217_v43  ;;  %1423 = vmatpush.msra.mxu3 %v2251_v44 }
  0xbf   : > { %1275 = vmatmul.f32.vlgmr.msra.gmra.mxu2 %v2267_v40 }
  0xc0   : > { %1306 = vmatpush.msra.mxu1 %v2233_v3  ;;  %1424 = vmatpush.msra.mxu3 %v2265_v4 }
  0xc1   : > { %1316 = vmatmul.f32.vlgmr.msra.gmra.mxu3 %v2267_v40 }
  0xc2   : > { %1308 = vmatpush.msra.mxu1 %v2251_v44  ;;  %v242_v25 = vpop.f32.mrf.mxu0 }
  0xc4   : > { %1310 = vmatpush.msra.mxu1 %v2265_v4 }
  0xc5   : > { %1312 = vmatmul.f32.vlgmr.msra.gmra.mxu1 %v2222_v2 }
  0xc9   : > { %v351_v6 = vpop.f32.mrf.mxu1 }
  0xca   : > { %v352_v11 = vadd.f32 %v351_v6, %v242_v25 }
  0xcb   : > { %v409_v23 = vpop.f32.mrf.mxu2 }
  0xcc   : > { %v410_v54 = vadd.f32 %v409_v23, %v352_v11 }
  0xcd   : > { %v453_v61 = vpop.f32.mrf.mxu3 }
  0xce   : > { %v454_v39 = vadd.f32 %v453_v61, %v410_v54 }
  0xd0   : > { %v250_v48 = vpop.f32.mrf.mxu0 }
  0xd4   : > { %v355_v60 = vpop.f32.mrf.mxu1  ;;  %v414_v5 = vpop.f32.mrf.mxu2 }
  0xd5   : > { %v356_v20 = vadd.f32 %v355_v60, %v250_v48 }
  0xd7   : > { %v459_v15 = vpop.f32.mrf.mxu3  ;;  %v415_v57 = vadd.f32 %v414_v5, %v356_v20 }
  0xd9   : > { %v460_v43 = vadd.f32 %v459_v15, %v415_v57 }
  0xda   : > { %v528_v53 = vpop.f32.mrf.mxu0 }
  0xdb   : > { %v529_v3 = vadd.f32 %v528_v53, %v454_v39 }
  0xdd   : > { %v569_v22 = vpop.f32.mrf.mxu1 }
  0xde   : > { %v614_v30 = vpop.f32.mrf.mxu2  ;;  %v570_v8 = vadd.f32 %v569_v22, %v529_v3 }
  0xe0   : > { %v615_v44 = vadd.f32 %v614_v30, %v570_v8 }
  0xe1   : > { %v723_v13 = vpop.f32.mrf.mxu3 }
  0xe2   : > { %v724_v34 = vadd.f32 %v723_v13, %v615_v44 }
  0xe8   : > { %v532_v49 = vpop.f32.mrf.mxu0 }
  0xe9   : > { %v533_v35 = vadd.f32 %v532_v49, %v460_v43 }
  0xf1   : > { %v573_v41 = vpop.f32.mrf.mxu1 }
  0xf2   : > { %v622_v63 = vpop.f32.mrf.mxu2  ;;  %v781_v2 = vpop.f32.mrf.mxu0  ;;  %v574_v26 = vadd.f32 %v573_v41, %v533_v35 }
  0xf3   : > { %v782_v28 = vadd.f32 %v781_v2, %v724_v34 }
  0xf4   : > { %v623_v17 = vadd.f32 %v622_v63, %v574_v26 }
  0xf5   : > { %v727_v58 = vpop.f32.mrf.mxu3 }
  0xf6   : > { %v728_v37 = vadd.f32 %v727_v58, %v623_v17 }
  0xfc   : > { %v825_v24 = vpop.f32.mrf.mxu1  ;;  %v900_v27 = vpop.f32.mrf.mxu2 }
  0xfd   : > { %v826_v40 = vadd.f32 %v825_v24, %v782_v28 }
  0xff   : > { %v941_v19 = vpop.f32.mrf.mxu3  ;;  %v901_v46 = vadd.f32 %v900_v27, %v826_v40 }
 0x100   : > { %v786_v9 = vpop.f32.mrf.mxu0 }
 0x101   : > { %v787_v12 = vadd.f32 %v786_v9, %v728_v37  ;;  %v942_v45 = vadd.f32 %v941_v19, %v901_v46 }
 0x105   : > { %v831_v16 = vpop.f32.mrf.mxu1 }
 0x106   : > { %v904_v36 = vpop.f32.mrf.mxu2  ;;  %v832_v59 = vadd.f32 %v831_v16, %v787_v12 }
 0x108   : > { %v905_v51 = vadd.f32 %v904_v36, %v832_v59 }
 0x109   : > { %v945_v38 = vpop.f32.mrf.mxu3 }
 0x10a   : > { %v946_v42 = vadd.f32 %v945_v38, %v905_v51 }
 0x116   : > { %v986_v4 = vpop.f32.mrf.mxu0 }
 0x117   : > { %v987_v56 = vadd.f32 %v986_v4, %v942_v45 }
 0x11f   : > { %v994_v0 = vpop.f32.mrf.mxu0 }
 0x120   : > { %v1095_v50 = vpop.f32.mrf.mxu1  ;;  %v1153_v10 = vpop.f32.mrf.mxu2  ;;  %v995_v7 = vadd.f32 %v994_v0, %v946_v42 }
 0x121   : > { %v1096_v31 = vadd.f32 %v1095_v50, %v987_v56 }
 0x123   : > { %v1197_v21 = vpop.f32.mrf.mxu3  ;;  %v1154_v52 = vadd.f32 %v1153_v10, %v1096_v31 }
 0x125   : > { %v1198_v47 = vadd.f32 %v1197_v21, %v1154_v52 }
 0x129   : > { %v1099_v55 = vpop.f32.mrf.mxu1 }
 0x12a   : > { %v1100_v32 = vadd.f32 %v1099_v55, %v995_v7  ;;  %v1158_v29 = vpop.f32.mrf.mxu2 }
 0x12c   : > { %v1159_v14 = vadd.f32 %v1158_v29, %v1100_v32 }
 0x12d   : > { %v1203_v33 = vpop.f32.mrf.mxu3 }
 0x12e   : > { %v1204_v18 = vadd.f32 %v1203_v33, %v1159_v14 }
 0x13a   : > { %v1272_v62 = vpop.f32.mrf.mxu0 }
 0x13b   : > { %v1273_v1 = vadd.f32 %v1272_v62, %v1198_v47 }
 0x142   : > { %v1276_v25 = vpop.f32.mrf.mxu2  ;;  %v1313_v6 = vpop.f32.mrf.mxu1 }
 0x143   : > { %v1277_v23 = vadd.f32 %v1276_v25, %v1204_v18  ;;  %v1314_v61 = vadd.f32 %v1313_v6, %v1273_v1 }
 0x144   : > { %v1317_v48 = vpop.f32.mrf.mxu3 }
 0x145   : > { %v1320_v60 = vmax.f32 %v1314_v61, 0.0  ;;  %v1318_v5 = vadd.f32 %v1317_v48, %v1277_v23 }
 0x147   : > { %v1322_v15 = vmin.f32 %v1320_v60, 6.0  ;;  %v1321_v53 = vmax.f32 %v1318_v5, 0.0 }
 0x149   : > { %1324 = vst [vmem:[%s148_s8] sm:$0xff] %v1322_v15  ;;  %v1323_v22 = vmin.f32 %v1321_v53, 6.0 }
 0x14b   : > { %1325 = vst [vmem:[%s148_s8 + $0x8] sm:$0xff] %v1323_v22 }
 0x14c PF: > { %s12_s9 = sadd.s32 1, %s1440_s9  }
 0x14d   : > { %p9_p4 = scmp.ge.s32.totalorder %s12_s9, 4  }
 0x14f   :  { %11 = sbr.rel (!%p9_p4) target bundleno = 1 (0x1), region = 58 }

</bundles_post_ra>
